<compile_context>
chip_gen: v7x
topology: tpu7x:2x2x1
jax: 0.10.0
libtpu: 0.0.40
codegen_flags: <defaults>
</compile_context>

<pallas_src>
import jax
import jax.numpy as jnp
from jax.experimental import pallas as pl
from jax.experimental.pallas import tpu as pltpu

FEAT_NUM = 128
CLASS_NUM = 16
BN_EPS = 1e-5


def _round_up(x, m):
    return (x + m - 1) // m * m


def _cross_kernel(probe_ref, gallery_t_ref, wcross_ref, out_ref):
    """Per probe-row tile: class-major cross term of the bilinear decomposition.

    probe_ref:     (tm, F)    probe tile (streams)
    gallery_t_ref: (F, Ng)    gallery, pre-transposed (resident)
    wcross_ref:    (C, F)     -2 * (W * gamma*rsqrt(var+eps))  (resident)
    out_ref:       (C, tm, Ng) = sum_f wcross[c,f] * p[i,f] * g[j,f]
    """
    p = probe_ref[...]                                    # (tm, F)
    w = wcross_ref[...]                                   # (C, F)
    c, f = w.shape
    tm = p.shape[0]
    # Per-class scaled probe rows, stacked class-major: (C*tm, F).
    # tm is a multiple of 8, so the merge/split reshapes are sublane-aligned
    # (no relayout copies).
    lhs = (w[:, None, :] * p[None, :, :]).reshape(c * tm, f)
    cross = jnp.dot(lhs, gallery_t_ref[...],
                    preferred_element_type=jnp.float32)   # (C*tm, Ng)
    out_ref[...] = cross.reshape(c, tm, -1)


@jax.jit
def classifier_forward(probe_x, gallery_x, gamma, beta, weight, bias):
    """probe_x: (Np, F), gallery_x: (Ng, F), weight: (C, F), bias: (C,)."""
    n_p, f = probe_x.shape
    n_g = gallery_x.shape[0]
    c = weight.shape[0]

    p32 = probe_x.astype(jnp.float32)
    g32 = gallery_x.astype(jnp.float32)
    gamma32 = gamma.astype(jnp.float32)
    beta32 = beta.astype(jnp.float32)
    w32 = weight.astype(jnp.float32)
    b32 = bias.astype(jnp.float32)

    # ---- Exact BN batch stats of the (Np*Ng, F) diff matrix from centered
    #      per-feature moments (the all-pairs expectation factorizes). ----
    mp = jnp.mean(p32, axis=0)
    mg = jnp.mean(g32, axis=0)
    dp = p32 - mp
    dg = g32 - mg
    dp2 = dp * dp
    dg2 = dg * dg
    vp = jnp.mean(dp2, axis=0)
    vg = jnp.mean(dg2, axis=0)
    sp3 = jnp.mean(dp2 * dp, axis=0)
    sg3 = jnp.mean(dg2 * dg, axis=0)
    sp4 = jnp.mean(dp2 * dp2, axis=0)
    sg4 = jnp.mean(dg2 * dg2, axis=0)
    m = mp - mg
    mean_d = m * m + vp + vg                               # E[(p-g)^2]
    var_d = (4.0 * m * m * (vp + vg) + 4.0 * m * (sp3 - sg3)
             + (sp4 - vp * vp) + (sg4 - vg * vg) + 4.0 * vp * vg)
    var_d = jnp.maximum(var_d, 0.0)                        # biased variance

    # ---- Fold BN into the classifier (tiny XLA ops, no extra kernel launch). ----
    s = gamma32 * jax.lax.rsqrt(var_d + BN_EPS)            # (F,)
    wfold = w32 * s[None, :]                               # (C, F)
    bfold = b32 + (beta32 - mean_d * s) @ w32.T            # (C,)

    # Rank-reduction terms (fused into the compact epilogue add).
    rowterm = (p32 * p32) @ wfold.T                        # (Np, C)
    colterm = (g32 * g32) @ wfold.T + bfold[None, :]       # (Ng, C)
    wcross = -2.0 * wfold                                  # (C, F)
    gallery_t = g32.T                                      # (F, Ng)

    # ---- Tile the probe axis: 2-4 (even) grid steps, VMEM-bounded tm. ----
    n_p8 = _round_up(max(n_p, 1), 8)
    tm_cap = 512                                           # lhs = C*tm*F*4 <= 4 MiB
    steps = max(2, -(-n_p8 // tm_cap))
    steps += steps % 2                                     # even -> v7x megacore balance
    tm = _round_up(-(-n_p8 // steps), 8)
    if tm >= n_p8:
        tm = n_p8                                          # tiny Np: single step
    n_p_pad = _round_up(max(n_p, 1), tm)
    probe_pad = p32 if n_p_pad == n_p else jnp.pad(
        p32, ((0, n_p_pad - n_p), (0, 0)))

    grid = (n_p_pad // tm,)
    cross = pl.pallas_call(
        _cross_kernel,
        out_shape=jax.ShapeDtypeStruct((c, n_p_pad, n_g), jnp.float32),
        grid_spec=pltpu.PrefetchScalarGridSpec(
            num_scalar_prefetch=0,
            grid=grid,
            in_specs=[
                pl.BlockSpec((tm, f), lambda i: (i, 0)),     # probe tile (streams)
                pl.BlockSpec((f, n_g), lambda i: (0, 0)),    # gallery^T (resident)
                pl.BlockSpec((c, f), lambda i: (0, 0)),      # -2*W' (resident)
            ],
            out_specs=pl.BlockSpec((c, tm, n_g), lambda i: (0, i, 0)),
        ),
        compiler_params=pltpu.CompilerParams(
            dimension_semantics=("parallel",),               # megacore on v7x
            vmem_limit_bytes=48 * 1024 * 1024),
    )(probe_pad, gallery_t, wcross)

    # Compact epilogue: one fused XLA pass (transpose + rank-1 adds) over the
    # un-padded (C, Np, Ng) kernel output; no padded columns ever touch HBM.
    out = (jnp.transpose(cross[:, :n_p, :], (1, 2, 0))
           + rowterm[:, None, :]
           + colterm[None, :, :])
    return out


def _reference_forward(probe_x, gallery_x, gamma, beta, weight, bias):
    n_p = probe_x.shape[0]
    n_g = gallery_x.shape[0]
    d = (probe_x[:, None, :] - gallery_x[None, :, :]) ** 2
    d = d.reshape(n_p * n_g, -1)
    mean = jnp.mean(d, axis=0, keepdims=True)
    var = jnp.mean((d - mean) ** 2, axis=0, keepdims=True)
    xhat = (d - mean) / jnp.sqrt(var + BN_EPS) * gamma[None, :] + beta[None, :]
    out = xhat @ weight.T + bias[None, :]
    return out.reshape(n_p, n_g, -1)


if __name__ == "__main__":
    key = jax.random.PRNGKey(0)
    k_probe, k_gallery, k_w = jax.random.split(key, 3)

    N_PROBE, N_GALLERY = 8, 8
    probe_x = jax.random.normal(k_probe, (N_PROBE, FEAT_NUM), dtype=jnp.float32)
    gallery_x = jax.random.normal(k_gallery, (N_GALLERY, FEAT_NUM),
                                  dtype=jnp.float32)

    # Parameter init mirroring the PyTorch __init__:
    gamma = jnp.ones((FEAT_NUM,), jnp.float32)                      # BN weight = 1
    beta = jnp.zeros((FEAT_NUM,), jnp.float32)                      # BN bias = 0
    weight = 0.001 * jax.random.normal(k_w, (CLASS_NUM, FEAT_NUM),  # Linear, std=1e-3
                                       dtype=jnp.float32)
    bias = jnp.zeros((CLASS_NUM,), jnp.float32)                     # Linear bias = 0

    out = classifier_forward(probe_x, gallery_x, gamma, beta, weight, bias)
    out = jax.block_until_ready(out)

    ref = _reference_forward(probe_x, gallery_x, gamma, beta, weight, bias)
    assert out.shape == (N_PROBE, N_GALLERY, CLASS_NUM)
    assert jnp.allclose(out, ref, atol=1e-4, rtol=1e-4), (
        float(jnp.max(jnp.abs(out - ref))))

    print("KERNEL_OK")
</pallas_src>

<mosaic_0001>
module attributes {stable_mosaic.version = 11 : i64} {
  func.func @_cross_kernel(%arg0: i32, %arg1: memref<8x128xf32, #tpu.memory_space<vmem>>, %arg2: memref<128x8xf32, #tpu.memory_space<vmem>>, %arg3: memref<16x128xf32, #tpu.memory_space<vmem>>, %arg4: memref<16x8x8xf32, #tpu.memory_space<vmem>>) attributes {dimension_semantics = [#tpu.dimension_semantics<parallel>], iteration_bounds = array<i64: 1>, scalar_prefetch = 0 : i64, scratch_operands = 0 : i64, tpu.core_type = #tpu.core_type<tc>, window_params = [{transform_indices = @transform_0, window_bounds = array<i64: 8, 128>}, {pipeline_mode = #tpu.pipeline_mode<synchronous>, transform_indices = @transform_1, window_bounds = array<i64: 128, 8>}, {pipeline_mode = #tpu.pipeline_mode<synchronous>, transform_indices = @transform_2, window_bounds = array<i64: 16, 128>}, {transform_indices = @transform_3, window_bounds = array<i64: 16, 8, 8>}]} {
    %c0 = arith.constant 0 : index
    %c0_0 = arith.constant 0 : index
    %0 = vector.load %arg1[%c0, %c0_0] : memref<8x128xf32, #tpu.memory_space<vmem>>, vector<8x128xf32>
    %c0_1 = arith.constant 0 : index
    %c0_2 = arith.constant 0 : index
    %1 = vector.load %arg3[%c0_1, %c0_2] : memref<16x128xf32, #tpu.memory_space<vmem>>, vector<16x128xf32>
    %2 = vector.shape_cast %1 : vector<16x128xf32> to vector<16x1x128xf32>
    %3 = vector.shape_cast %0 : vector<8x128xf32> to vector<1x8x128xf32>
    %4 = vector.broadcast %2 : vector<16x1x128xf32> to vector<16x8x128xf32>
    %5 = vector.broadcast %3 : vector<1x8x128xf32> to vector<16x8x128xf32>
    %6 = arith.mulf %4, %5 : vector<16x8x128xf32>
    %7 = vector.shape_cast %6 : vector<16x8x128xf32> to vector<128x128xf32>
    %c0_3 = arith.constant 0 : index
    %c0_4 = arith.constant 0 : index
    %8 = vector.load %arg2[%c0_3, %c0_4] : memref<128x8xf32, #tpu.memory_space<vmem>>, vector<128x8xf32>
    %cst = arith.constant dense<0.000000e+00> : vector<128x8xf32>
    %9 = tpu.matmul %7, %8, %cst {dimension_numbers = #tpu.dot_dimension_numbers<[1], [0], [0], [1], [0, 0, 1, 1], [], []>} : vector<128x128xf32>, vector<128x8xf32>, vector<128x8xf32> -> vector<128x8xf32>
    %10 = vector.shape_cast %9 : vector<128x8xf32> to vector<16x8x8xf32>
    %c0_5 = arith.constant 0 : index
    %c0_6 = arith.constant 0 : index
    %c0_7 = arith.constant 0 : index
    %11 = vector.load %arg4[%c0_5, %c0_6, %c0_7] : memref<16x8x8xf32, #tpu.memory_space<vmem>>, vector<16x8x8xf32>
    tpu.vector_store %arg4[%c0_5, %c0_6, %c0_7], %10 {strides = array<i32>} : memref<16x8x8xf32, #tpu.memory_space<vmem>>, vector<16x8x8xf32>,
    return
  }
  func.func @transform_0(%arg0: i32) -> (i32, i32) {
    %c0_i32 = arith.constant 0 : i32
    %c0_i32_0 = arith.constant 0 : i32
    return %arg0, %c0_i32 : i32, i32
  }
  func.func @transform_1(%arg0: i32) -> (i32, i32) {
    %c0_i32 = arith.constant 0 : i32
    %c0_i32_0 = arith.constant 0 : i32
    %c0_i32_1 = arith.constant 0 : i32
    return %c0_i32, %c0_i32_0 : i32, i32
  }
  func.func @transform_2(%arg0: i32) -> (i32, i32) {
    %c0_i32 = arith.constant 0 : i32
    %c0_i32_0 = arith.constant 0 : i32
    %c0_i32_1 = arith.constant 0 : i32
    return %c0_i32, %c0_i32_0 : i32, i32
  }
  func.func @transform_3(%arg0: i32) -> (i32, i32, i32) {
    %c0_i32 = arith.constant 0 : i32
    %c0_i32_0 = arith.constant 0 : i32
    %c0_i32_1 = arith.constant 0 : i32
    return %c0_i32, %arg0, %c0_i32_0 : i32, i32, i32
  }
}

</mosaic_0001>

<bundles_post_ra>
// kernel: classifier_forward.1
= control target key start
LH: loop header
LB: loop body
LE: loop exit
PB: predicated region body
PF: predicated region fallthrough
CT: control target
= control target key end

     0   :  { %v23_v0 = vlaneseq  ;;  %v534_v4 = vmov 1966171168   ;;  %vm374_vm0 = vcmask 64512   ;;  %s726_s1 = inlined_call_operand.vmem [shape: f32[128,8], index: 1, kind: input, shape index: {}]   ;;  %s727_s2 = inlined_call_operand.vmem [shape: f32[16,128], index: 2, kind: input, shape index: {}]   ;;  %s728_s0 = inlined_call_operand.vmem [shape: f32[8,128], index: 0, kind: input, shape index: {}]   ;;  %s729_s3 = inlined_call_operand.vmem [shape: f32[16,8,8], index: 3, kind: output, shape index: {}]  }
   0x1   :  { %v213_v1 = vld [vmem:[%s726_s1] sm:$0xff]  ;;  %v214_v2 = vld [vmem:[%s726_s1 + $0x8] sm:$0xff]  ;;  %v215_v3 = vld [vmem:[%s726_s1 + $0x10] sm:$0xff]  ;;  %v21_v5 = vunpack.c.l.s4 %v534_v4 }
   0x2   :  { %v483_v6 = vpack.c.bf16 %v214_v2, %v213_v1  ;;  %v216_v7 = vld [vmem:[%s726_s1 + $0x18] sm:$0xff]  ;;  %v24_v8 = vshrl.u32 %v23_v0, 7  ;;  %v217_v10 = vld [vmem:[%s726_s1 + $0x20] sm:$0xff]  ;;  %v218_v11 = vld [vmem:[%s726_s1 + $0x28] sm:$0xff] }
   0x3   :  { %v487_v9 = vpack.c.bf16 %v216_v7, %v215_v3  ;;  %v22_v12 = vunpack.c.0.s8 %v21_v5  ;;  %v491_v14 = vpack.c.bf16 %v218_v11, %v217_v10  ;;  %v15_v15 = vld [vmem:[%s727_s2] sm:$0xff]  ;;  %v219_v16 = vld [vmem:[%s726_s1 + $0x30] sm:$0xff]  ;;  %v220_v17 = vld [vmem:[%s726_s1 + $0x38] sm:$0xff] }
   0x4   :  { %484 = vmatprep.subr.bf16.mxu0 %v483_v6  ;;  %515 = vmatprep.subr.bf16.mxu1 %v483_v6  ;;  %v585_v19 = vsub.s32 0, %v24_v8  ;;  %v16_v20 = vld [vmem:[%s727_s2 + $0x8] sm:$0xff]  ;;  %v495_v23 = vpack.c.bf16 %v220_v17, %v219_v16  ;;  %v595_v24 = vld [vmem:[%s728_s0] sm:$0xff]  ;;  %v223_v33 = vld [vmem:[%s726_s1 + $0x50] sm:$0xff]  ;;  %v19_v39 = vcombine.high %v15_v15, %v15_v15 }
   0x5   :  { %486 = vmatpush3.bf16.msra.mxu0 %v483_v6  ;;  %523 = vmatpush3.bf16.msra.mxu1 %v483_v6  ;;  %v573_v13 = vsub.s32 %v22_v12, %v24_v8  ;;  %v221_v26 = vld [vmem:[%s726_s1 + $0x40] sm:$0xff]  ;;  %v222_v27 = vld [vmem:[%s726_s1 + $0x48] sm:$0xff]  ;;  %v224_v34 = vld [vmem:[%s726_s1 + $0x58] sm:$0xff]  ;;  %v68_v40 = vcombine.high %v16_v20, %v16_v20 }
   0x6   :  { %488 = vmatprep.subr.bf16.mxu0 %v487_v9  ;;  %516 = vmatprep.subr.bf16.mxu1 %v487_v9  ;;  %v499_v31 = vpack.c.bf16 %v222_v27, %v221_v26  ;;  %v503_v35 = vpack.c.bf16 %v224_v34, %v223_v33  ;;  %v225_v37 = vld [vmem:[%s726_s1 + $0x60] sm:$0xff]  ;;  %v226_v38 = vld [vmem:[%s726_s1 + $0x68] sm:$0xff]  ;;  %v227_v44 = vld [vmem:[%s726_s1 + $0x70] sm:$0xff] }
   0x7   :  { %v26_v18 = vrot.slane %v15_v15, %v573_v13  ;;  %v75_v21 = vrot.slane %v16_v20, %v573_v13  ;;  %v507_v42 = vpack.c.bf16 %v226_v38, %v225_v37  ;;  %v228_v45 = vld [vmem:[%s726_s1 + $0x78] sm:$0xff]  ;;  %v33_v46 = vrot.slane %v19_v39, %v573_v13 }
   0x8   :  { %v82_v50 = vrot.slane %v68_v40, %v573_v13  ;;  %v511_v51 = vpack.c.bf16 %v228_v45, %v227_v44 }
   0x9   :  { %490 = vmatpush3.bf16.msra.mxu0 %v487_v9  ;;  %524 = vmatpush3.bf16.msra.mxu1 %v487_v9  ;;  %v42_v22 = vrot.slane %v26_v18, %v573_v13  ;;  %v91_v25 = vrot.slane %v75_v21, %v573_v13  ;;  %v34_v36 = vcombine.high %v26_v18, %v26_v18 }
   0xa   :  { %492 = vmatprep.subr.bf16.mxu0 %v491_v14  ;;  %517 = vmatprep.subr.bf16.mxu1 %v491_v14  ;;  %v83_v41 = vcombine.high %v75_v21, %v75_v21  ;;  %v49_v55 = vrot.slane %v33_v46, %v573_v13  ;;  %v35_v56 = vcombine.high %v33_v46, %v33_v46 }
   0xb   :  { %v120_v28 = vrot.slane %v42_v22, %v585_v19  ;;  %v152_v29 = vrot.slane %v91_v25, %v585_v19  ;;  %v56_v43 = vrot.slane %v34_v36, %v573_v13  ;;  %v64_v47 = vcombine.high %v42_v22, %v42_v22 }
   0xc   :  { %v113_v48 = vcombine.high %v91_v25, %v91_v25  ;;  %v105_v49 = vrot.slane %v83_v41, %v573_v13  ;;  %v84_v60 = vcombine.high %v82_v50, %v82_v50  ;;  %v98_v61 = vrot.slane %v82_v50, %v573_v13 }
   0xd   :  { %494 = vmatpush3.bf16.msra.mxu0 %v491_v14  ;;  %525 = vmatpush3.bf16.msra.mxu1 %v491_v14  ;;  %v197_v30 = vmul.f32 %v120_v28, %v595_v24  ;;  %v205_v32 = vmul.f32 %v152_v29, %v595_v24  ;;  %v124_v52 = vrot.slane %v56_v43, %v585_v19 }
   0xe   :  { %496 = vmatprep.subr.bf16.mxu0 %v495_v23  ;;  %518 = vmatprep.subr.bf16.mxu1 %v495_v23  ;;  %v66_v53 = vcombine.high %v56_v43, %v56_v43  ;;  %v115_v54 = vcombine.high %v105_v49, %v105_v49  ;;  %v156_v57 = vrot.slane %v105_v49, %v585_v19 }
   0xf   :  { %459 = vmatprep.mubr.f32.mxu0 %v197_v30  ;;  %471 = vmatprep.mubr.f32.mxu1 %v205_v32  ;;  %v128_v58 = vrot.slane %v64_v47, %v585_v19  ;;  %v160_v59 = vrot.slane %v113_v48, %v585_v19  ;;  %v198_v62 = vmul.f32 %v124_v52, %v595_v24 }
  0x10   :  { %v132_v63 = vrot.slane %v66_v53, %v585_v19  ;;  %v164_v0 = vrot.slane %v115_v54, %v585_v19  ;;  %v136_v1 = vrot.slane %v49_v55, %v585_v19  ;;  %v63_v2 = vrot.slane %v35_v56, %v573_v13 }
  0x11   :  { %498 = vmatpush3.bf16.msra.mxu0 %v495_v23  ;;  %526 = vmatpush3.bf16.msra.mxu1 %v495_v23  ;;  %v206_v3 = vmul.f32 %v156_v57, %v595_v24  ;;  %v199_v4 = vmul.f32 %v128_v58, %v595_v24  ;;  %v207_v5 = vmul.f32 %v160_v59, %v595_v24 }
  0x12   :  { %500 = vmatprep.subr.bf16.mxu0 %v499_v31  ;;  %519 = vmatprep.subr.bf16.mxu1 %v499_v31  ;;  %v112_v6 = vrot.slane %v84_v60, %v573_v13  ;;  %v168_v7 = vrot.slane %v98_v61, %v585_v19  ;;  %v65_v8 = vcombine.high %v49_v55, %v49_v55 }
  0x13   :  { %v114_v9 = vcombine.high %v98_v61, %v98_v61  ;;  %v200_v10 = vmul.f32 %v132_v63, %v595_v24  ;;  %v208_v11 = vmul.f32 %v164_v0, %v595_v24  ;;  %v201_v12 = vmul.f32 %v136_v1, %v595_v24 }
  0x14   :  { %v140_v14 = vrot.slane %v63_v2, %v585_v19  ;;  %v172_v15 = vrot.slane %v112_v6, %v585_v19  ;;  %v67_v16 = vcombine.high %v63_v2, %v63_v2  ;;  %v116_v13 = vcombine.high %v112_v6, %v112_v6 }
  0x15   :  { %502 = vmatpush3.bf16.msra.mxu0 %v499_v31  ;;  %527 = vmatpush3.bf16.msra.mxu1 %v499_v31  ;;  %v209_v17 = vmul.f32 %v168_v7, %v595_v24  ;;  %v144_v18 = vrot.slane %v65_v8, %v585_v19  ;;  %v176_v20 = vrot.slane %v114_v9, %v585_v19 }
  0x16   :  { %504 = vmatprep.subr.bf16.mxu0 %v503_v35  ;;  %520 = vmatprep.subr.bf16.mxu1 %v503_v35  ;;  %v202_v21 = vmul.f32 %v140_v14, %v595_v24  ;;  %v210_v22 = vmul.f32 %v172_v15, %v595_v24  ;;  %v148_v23 = vrot.slane %v67_v16, %v585_v19 }
  0x17   :  { %v180_v25 = vrot.slane %v116_v13, %v585_v19  ;;  %v203_v26 = vmul.f32 %v144_v18, %v595_v24  ;;  %v211_v27 = vmul.f32 %v176_v20, %v595_v24 }
  0x18   :  { %v204_v28 = vmul.f32 %v148_v23, %v595_v24 }
  0x19   :  { %506 = vmatpush3.bf16.msra.mxu0 %v503_v35  ;;  %528 = vmatpush3.bf16.msra.mxu1 %v503_v35  ;;  %v212_v29 = vmul.f32 %v180_v25, %v595_v24 }
  0x1a   :  { %508 = vmatprep.subr.bf16.mxu0 %v507_v42  ;;  %521 = vmatprep.subr.bf16.mxu1 %v507_v42 }
  0x1d   :  { %510 = vmatpush3.bf16.msra.mxu0 %v507_v42  ;;  %529 = vmatpush3.bf16.msra.mxu1 %v507_v42 }
  0x1e   :  { %512 = vmatprep.subr.bf16.mxu0 %v511_v51  ;;  %522 = vmatprep.subr.bf16.mxu1 %v511_v51 }
  0x21   :  { %514 = vmatpush3.bf16.msra.mxu0 %v511_v51  ;;  %530 = vmatpush3.bf16.msra.mxu1 %v511_v51 }
  0x24   :  { %460 = vmatmul.mubr.f32.vlgmr.msra.gmra.mrb[0].mxu0 %v198_v62  ;;  %472 = vmatmul.mubr.f32.vlgmr.msra.gmra.mrb[0].mxu1 %v206_v3 }
  0x25   :  { %462 = vmatprep.mubr.f32.mxu0 %v199_v4  ;;  %474 = vmatprep.mubr.f32.mxu1 %v207_v5 }
  0x28   :  { %463 = vmatmul.mubr.f32.gmra.mrb[2].mxu0 %v200_v10  ;;  %475 = vmatmul.mubr.f32.gmra.mrb[2].mxu1 %v208_v11 }
  0x29   :  { %465 = vmatprep.mubr.f32.mxu0 %v201_v12  ;;  %477 = vmatprep.mubr.f32.mxu1 %v209_v17 }
  0x2c   :  { %466 = vmatmul.mubr.f32.gmra.mrb[4].mxu0 %v202_v21  ;;  %478 = vmatmul.mubr.f32.gmra.mrb[4].mxu1 %v210_v22 }
  0x2d   :  { %468 = vmatprep.mubr.f32.mxu0 %v203_v26  ;;  %480 = vmatprep.mubr.f32.mxu1 %v211_v27 }
  0x30   :  { %469 = vmatmul.mubr.f32.gmra.mrb[6].mxu0 %v204_v28  ;;  %481 = vmatmul.mubr.f32.gmra.mrb[6].mxu1 %v212_v29 }
  0xf7   :  { %v461_v30 = vpop.f32.mrb[0].mxu0  ;;  %v473_v31 = vpop.f32.mrb[0].mxu1 }
  0xf8   :  { %376 = vst.msk [vmem:[%s729_s3 + $0x8] sm:$0xff] %vm374_vm0, %v461_v30  ;;  %384 = vst.msk [vmem:[%s729_s3 + $0x48] sm:$0xff] %vm374_vm0, %v473_v31  ;;  %v295_v19 = vpop.f32.mrb[1].mxu0  ;;  %v335_v32 = vpop.f32.mrb[1].mxu1 }
  0xf9   :  { %375 = vst.msk [vmem:[%s729_s3] sm:$0xff] %vm374_vm0, %v295_v19  ;;  %383 = vst.msk [vmem:[%s729_s3 + $0x40] sm:$0xff] %vm374_vm0, %v335_v32 }
  0xfb   :  { %v464_v24 = vpop.f32.mrb[2].mxu0  ;;  %v476_v33 = vpop.f32.mrb[2].mxu1 }
  0xfc   :  { %378 = vst.msk [vmem:[%s729_s3 + $0x18] sm:$0xff] %vm374_vm0, %v464_v24  ;;  %386 = vst.msk [vmem:[%s729_s3 + $0x58] sm:$0xff] %vm374_vm0, %v476_v33  ;;  %v305_v34 = vpop.f32.mrb[3].mxu0  ;;  %v345_v35 = vpop.f32.mrb[3].mxu1 }
  0xfd   :  { %377 = vst.msk [vmem:[%s729_s3 + $0x10] sm:$0xff] %vm374_vm0, %v305_v34  ;;  %385 = vst.msk [vmem:[%s729_s3 + $0x50] sm:$0xff] %vm374_vm0, %v345_v35 }
  0xff   :  { %v467_v36 = vpop.f32.mrb[4].mxu0  ;;  %v479_v37 = vpop.f32.mrb[4].mxu1 }
 0x100   :  { %380 = vst.msk [vmem:[%s729_s3 + $0x28] sm:$0xff] %vm374_vm0, %v467_v36  ;;  %388 = vst.msk [vmem:[%s729_s3 + $0x68] sm:$0xff] %vm374_vm0, %v479_v37  ;;  %v315_v38 = vpop.f32.mrb[5].mxu0  ;;  %v355_v39 = vpop.f32.mrb[5].mxu1 }
 0x101   :  { %379 = vst.msk [vmem:[%s729_s3 + $0x20] sm:$0xff] %vm374_vm0, %v315_v38  ;;  %387 = vst.msk [vmem:[%s729_s3 + $0x60] sm:$0xff] %vm374_vm0, %v355_v39 }
 0x103   :  { %v470_v40 = vpop.f32.mrb[6].mxu0  ;;  %v482_v41 = vpop.f32.mrb[6].mxu1 }
 0x104   :  { %382 = vst.msk [vmem:[%s729_s3 + $0x38] sm:$0xff] %vm374_vm0, %v470_v40  ;;  %390 = vst.msk [vmem:[%s729_s3 + $0x78] sm:$0xff] %vm374_vm0, %v482_v41  ;;  %v325_v42 = vpop.f32.mrb[7].mxu0  ;;  %v365_v43 = vpop.f32.mrb[7].mxu1 }
 0x105   :  { %381 = vst.msk [vmem:[%s729_s3 + $0x30] sm:$0xff] %vm374_vm0, %v325_v42  ;;  %389 = vst.msk [vmem:[%s729_s3 + $0x70] sm:$0xff] %vm374_vm0, %v365_v43 }

</bundles_post_ra>
